<compile_context>
chip_gen: v7x
topology: tpu7x:2x2x1
jax: 0.10.0
libtpu: 0.0.40
codegen_flags: <defaults>
</compile_context>

<pallas_src>
import functools

import jax
import jax.numpy as jnp
from jax import lax
from jax.experimental import pallas as pl
from jax.experimental.pallas import tpu as pltpu


def _round_up(x, m):
    return (x + m - 1) // m * m


# ---------------------------------------------------------------------------
# Kernel: graph propagation in transposed (lane-dense) layout.
#
# grid = (num_layers, 2, NB_i, NB_j)   (layer, phase, graph row blk, col blk)
#   phase 0:  hT[:, j]  (+)= eT[:, i] @ G[i, j]                 (== (G.T e).T)
#             at i == last: hT[:, j] *= filter[l, j]   (applied once per col)
#   phase 1:  eT'[:, i] (+)= hT[:, j] @ G[i, j]^T               (== (G h).T)
#             at j == last: out[:, i] += eT'[:, i] / (L + 1)
# eT / hT live in VMEM scratch for the whole kernel; the output block (constant
# index) is the resident layer-sum accumulator; only bf16 graph tiles stream
# from HBM; all accumulation is f32 (MXU bf16 x bf16 -> f32).
# ---------------------------------------------------------------------------
def _propagate_kernel(filt_ref, e0_ref, graph_ref, out_ref,
                      eT_s, hT_s, init_sem, *, num_layers, tn, tm):
    l = pl.program_id(0)
    p = pl.program_id(1)
    i = pl.program_id(2)
    j = pl.program_id(3)
    nb_i = pl.num_programs(2)
    nb_j = pl.num_programs(3)

    inv_layers = 1.0 / float(num_layers + 1)

    row = pl.ds(pl.multiple_of(i * tn, tn), tn)   # block of the N axis (lanes)
    col = pl.ds(pl.multiple_of(j * tm, tm), tm)   # block of the M axis (lanes)

    # Very first grid step: DMA emb0^T from HBM into the resident eT scratch
    # and seed the resident output accumulator with emb0 / (L + 1).
    @pl.when((l == 0) & (p == 0) & (i == 0) & (j == 0))
    def _init():
        cp = pltpu.make_async_copy(e0_ref, eT_s, init_sem)
        cp.start()
        cp.wait()
        out_ref[...] = eT_s[...] * inv_layers

    g = graph_ref[...]            # (tn, tm) bf16 tile; stays bf16 (MXU-native)

    @pl.when(p == 0)
    def _phase0():
        contrib = jnp.dot(eT_s[:, row].astype(jnp.bfloat16), g,
                          preferred_element_type=jnp.float32)    # (D, tm)

        @pl.when(i == 0)
        def _():
            hT_s[:, col] = contrib

        @pl.when(i > 0)
        def _():
            hT_s[:, col] = hT_s[:, col] + contrib

        # Column block complete -> apply the layer filter once (lane broadcast),
        # not once per (i, j) tile in phase 1.
        @pl.when(i == nb_i - 1)
        def _():
            hT_s[:, col] = hT_s[:, col] * filt_ref[0, :, col]

    @pl.when(p == 1)
    def _phase1():
        h_blk = hT_s[:, col].astype(jnp.bfloat16)                # (D, tm)
        # Contract the M axis of both operands -> (D, tn) == (G @ h).T block.
        # (Contracting rhs dim 1 == trans_b matmul; only the tiny D-sided
        #  operand ever needs re-layout, not the tn x tm graph tile.)
        contrib = lax.dot_general(
            h_blk, g, dimension_numbers=(((1,), (1,)), ((), ())),
            preferred_element_type=jnp.float32)                  # (D, tn)

        @pl.when(j == 0)
        def _():
            eT_s[:, row] = contrib

        @pl.when(j > 0)
        def _():
            eT_s[:, row] = eT_s[:, row] + contrib

        # Row block of this layer complete -> fold into the resident output
        # accumulator (written back to HBM only once, at the end of the grid).
        @pl.when(j == nb_j - 1)
        def _():
            out_ref[:, row] = out_ref[:, row] + eT_s[:, row] * inv_layers


# ---------------------------------------------------------------------------
# Wrappers
# ---------------------------------------------------------------------------
def agfn_propagate(graph, filt, emb_u, emb_b, *, num_layers, leaky, num_users,
                   tile_n=512, tile_m=1024):
    """Equivalent of AGFN._compute(): returns (users, bundles) embeddings."""
    emb0 = jnp.concatenate([emb_u, emb_b], axis=0).astype(jnp.float32)  # (N, D)
    N, D = emb0.shape
    M = graph.shape[1]

    # Hoisted out of the per-tile path: leaky_relu on the tiny (L, M) filter.
    filt_act = jnp.where(filt >= 0, filt, leaky * filt).astype(jnp.float32)

    # Clamp tiles to the (256-rounded) problem size: small graphs collapse to
    # a single tile whose block index is constant -> Pallas fetches the graph
    # once and it stays resident in VMEM for all layers ("graph residency").
    tile_n = min(tile_n, _round_up(N, 256))
    tile_m = min(tile_m, _round_up(M, 256))
    n_pad = _round_up(N, tile_n)
    m_pad = _round_up(M, tile_m)
    d_pad = _round_up(D, 8)

    # Lane-dense transposed layout: D on sublanes, N / M on lanes.
    e0t = jnp.zeros((d_pad, n_pad), jnp.float32).at[:D, :N].set(emb0.T)
    filt_p = jnp.zeros((num_layers, 1, m_pad), jnp.float32).at[:, 0, :M].set(filt_act)
    # Single bf16 copy of the graph, streamed by the kernel (no HBM transpose,
    # half the HBM bytes of f32); fed to the MXU in bf16, accumulated in f32.
    g = jnp.zeros((n_pad, m_pad), jnp.bfloat16).at[:N, :M].set(
        graph.astype(jnp.bfloat16))

    nb_i = n_pad // tile_n
    nb_j = m_pad // tile_m

    # VMEM budget: eT scratch + hT scratch + resident output block +
    # double-buffered bf16 graph tiles + filter row + slack.
    est = (2 * d_pad * n_pad * 4          # eT_s + out block (f32)
           + d_pad * m_pad * 4            # hT_s (f32)
           + 2 * tile_n * tile_m * 2      # graph tiles (double buffered, bf16)
           + 2 * m_pad * 4                # filter row
           + (2 << 20))                   # compiler slack
    vmem_limit = int(min(max(2 * est, 32 * 1024 * 1024), 100 * 1024 * 1024))

    kern = functools.partial(_propagate_kernel, num_layers=num_layers,
                             tn=tile_n, tm=tile_m)
    out_t = pl.pallas_call(
        kern,
        out_shape=jax.ShapeDtypeStruct((d_pad, n_pad), jnp.float32),
        grid_spec=pltpu.PrefetchScalarGridSpec(
            num_scalar_prefetch=0,
            grid=(num_layers, 2, nb_i, nb_j),
            in_specs=[
                # filter: one (1, 1, M_pad) row per layer, re-fetched only
                # when the layer index changes.
                pl.BlockSpec((1, 1, m_pad), lambda l, p, i, j: (l, 0, 0)),
                # emb0^T stays in HBM; DMA'd once into eT scratch at init so
                # there is no double-buffered VMEM copy of a constant input.
                pl.BlockSpec(memory_space=pl.ANY),
                # graph: streamed bf16 tile (resident when nb_i == nb_j == 1).
                pl.BlockSpec((tile_n, tile_m), lambda l, p, i, j: (i, j)),
            ],
            # The output block (constant index) IS the layer-sum accumulator:
            # resident across the grid, single HBM write-back at the end.
            out_specs=pl.BlockSpec((d_pad, n_pad), lambda l, p, i, j: (0, 0)),
            scratch_shapes=[
                pltpu.VMEM((d_pad, n_pad), jnp.float32),   # eT  (current layer)
                pltpu.VMEM((d_pad, m_pad), jnp.float32),   # hT  (mid propagation)
                pltpu.SemaphoreType.DMA(()),               # init-copy semaphore
            ]),
        compiler_params=pltpu.CompilerParams(
            # The resident scratch / output accumulators are shared across the
            # whole grid, so EVERY axis must stay sequential ("arbitrary").
            # Do NOT switch any axis to "parallel".
            dimension_semantics=("arbitrary", "arbitrary", "arbitrary", "arbitrary"),
            vmem_limit_bytes=vmem_limit),
    )(filt_p, e0t, g)

    final = out_t[:D, :N].T                       # (N, D)
    return final[:num_users], final[num_users:]


def agfn_forward(emb_u, emb_b, filt, graph, u_idx, b_idx,
                 *, num_layers, leaky, num_users, tile_n=512, tile_m=1024):
    users, bundles = agfn_propagate(graph, filt, emb_u, emb_b,
                                    num_layers=num_layers, leaky=leaky,
                                    num_users=num_users,
                                    tile_n=tile_n, tile_m=tile_m)
    # Tiny BPR epilogue (B*K*D FLOPs) + L2 on the raw tables, in plain JAX:
    # a standalone pallas_call here only adds launch / HBM re-read overhead.
    u_e = users[u_idx]                            # (B, D)
    b_e = bundles[b_idx]                          # (B, 2, D)
    rating = jnp.einsum('bkd,bd->bk', b_e, u_e)   # (B, 2)
    loss = jnp.mean(jax.nn.softplus(rating[:, 1] - rating[:, 0]))
    l2 = 0.5 * (jnp.sum(emb_u.astype(jnp.float32) ** 2)
                + jnp.sum(emb_b.astype(jnp.float32) ** 2)) / num_users
    return loss, l2


# ---------------------------------------------------------------------------
# Pure-JAX reference (mirrors the PyTorch forward)
# ---------------------------------------------------------------------------
def reference_propagate(emb_u, emb_b, filt, graph, *, num_layers, leaky, num_users):
    with jax.default_matmul_precision("highest"):
        f = jnp.where(filt >= 0, filt, leaky * filt)
        e = jnp.concatenate([emb_u, emb_b], axis=0)
        buf = [e]
        for l in range(num_layers):
            h = graph.T @ e
            h = h * f[l][:, None]
            e = graph @ h
            buf.append(e)
        final = jnp.mean(jnp.stack(buf, axis=1), axis=1)
    return final[:num_users], final[num_users:]


def reference_forward(emb_u, emb_b, filt, graph, u_idx, b_idx,
                      *, num_layers, leaky, num_users):
    users, bundles = reference_propagate(emb_u, emb_b, filt, graph,
                                         num_layers=num_layers, leaky=leaky,
                                         num_users=num_users)
    u_e = users[u_idx]
    b_e = bundles[b_idx]
    rating = jnp.einsum('bkd,bd->bk', b_e, u_e)
    loss = jnp.mean(jax.nn.softplus(rating[:, 1] - rating[:, 0]))
    l2 = 0.5 * (jnp.sum(emb_u ** 2) + jnp.sum(emb_b ** 2)) / num_users
    return loss, l2


# ---------------------------------------------------------------------------
# Test driver
# ---------------------------------------------------------------------------
def _rel_err(a, b):
    return float(jnp.max(jnp.abs(a - b)) / (jnp.max(jnp.abs(b)) + 1e-6))


def _run_case(seed, num_users, num_bundles, num_items, embedding_size,
              num_layers, leaky, batch, tile):
    N = num_users + num_bundles          # rows of graph
    M = num_items + num_users            # cols of graph

    key = jax.random.PRNGKey(seed)
    k_u, k_b, k_g, k_ui, k_bi = jax.random.split(key, 5)

    emb_u = 0.1 * jax.random.normal(k_u, (num_users, embedding_size), jnp.float32)
    emb_b = 0.1 * jax.random.normal(k_b, (num_bundles, embedding_size), jnp.float32)
    filt = jnp.ones((num_layers, M), jnp.float32)

    # Dense stand-in for the sparse bipartite graph; value 0.125 is exact in
    # bf16 and keeps propagation magnitudes ~O(1) so the relative-error checks
    # below genuinely measure the bf16-operand kernel against the f32 ref.
    graph = (jax.random.uniform(k_g, (N, M)) < 0.3).astype(jnp.float32) * 0.125

    u_idx = jax.random.randint(k_ui, (batch,), 0, num_users)
    b_idx = jax.random.randint(k_bi, (batch, 2), 0, num_bundles)

    users, bundles = agfn_propagate(graph, filt, emb_u, emb_b,
                                    num_layers=num_layers, leaky=leaky,
                                    num_users=num_users,
                                    tile_n=tile, tile_m=tile)
    loss, l2 = agfn_forward(emb_u, emb_b, filt, graph, u_idx, b_idx,
                            num_layers=num_layers, leaky=leaky,
                            num_users=num_users, tile_n=tile, tile_m=tile)
    jax.block_until_ready((users, bundles, loss, l2))

    ref_users, ref_bundles = reference_propagate(
        emb_u, emb_b, filt, graph,
        num_layers=num_layers, leaky=leaky, num_users=num_users)
    ref_loss, ref_l2 = reference_forward(
        emb_u, emb_b, filt, graph, u_idx, b_idx,
        num_layers=num_layers, leaky=leaky, num_users=num_users)

    # bf16 MXU operands vs "highest"-precision f32 reference: ~0.2-0.5% rel.
    assert _rel_err(users, ref_users) < 1e-2, ("users mismatch", _rel_err(users, ref_users))
    assert _rel_err(bundles, ref_bundles) < 1e-2, ("bundles mismatch", _rel_err(bundles, ref_bundles))
    assert jnp.allclose(loss, ref_loss, rtol=1e-2, atol=1e-3), (loss, ref_loss)
    assert jnp.allclose(l2, ref_l2, rtol=1e-5, atol=1e-7), (l2, ref_l2)


if __name__ == "__main__":
    # Case 1: tiny shapes consistent with AGFN.__init__ (single graph tile,
    # which the kernel keeps resident in VMEM across all layers).
    _run_case(seed=0, num_users=8, num_bundles=8, num_items=8,
              embedding_size=32, num_layers=2, leaky=0.2, batch=4, tile=256)

    # Case 2: exercises the 2x2 graph-tile grid (multi-block accumulation,
    # per-column filter application, phase ordering, output accumulation).
    _run_case(seed=1, num_users=70, num_bundles=70, num_items=100,
              embedding_size=32, num_layers=2, leaky=0.2, batch=4, tile=128)

    print("KERNEL_OK")
</pallas_src>

<mosaic_0001>
module attributes {stable_mosaic.version = 11 : i64} {
  func.func @_propagate_kernel(%arg0: i32, %arg1: i32, %arg2: i32, %arg3: i32, %arg4: memref<1x1x256xf32, #tpu.memory_space<vmem>>, %arg5: memref<32x256xf32, #tpu.memory_space<any>>, %arg6: memref<256x256xbf16, #tpu.memory_space<vmem>>, %arg7: memref<32x256xf32, #tpu.memory_space<vmem>>, %arg8: memref<32x256xf32, #tpu.memory_space<vmem>>, %arg9: memref<32x256xf32, #tpu.memory_space<vmem>>, %arg10: memref<!tpu.dma_semaphore, #tpu.memory_space<semaphore_mem>>) attributes {dimension_semantics = [#tpu.dimension_semantics<arbitrary>, #tpu.dimension_semantics<arbitrary>, #tpu.dimension_semantics<arbitrary>, #tpu.dimension_semantics<arbitrary>], iteration_bounds = array<i64: 2, 2, 1, 1>, scalar_prefetch = 0 : i64, scratch_operands = 3 : i64, tpu.core_type = #tpu.core_type<tc>, window_params = [{transform_indices = @transform_0, window_bounds = array<i64: 1, 1, 256>}, {}, {transform_indices = @transform_2, window_bounds = array<i64: 256, 256>}, {pipeline_mode = #tpu.pipeline_mode<synchronous>, transform_indices = @transform_3, window_bounds = array<i64: 32, 256>}]} {
    %c256_i32 = arith.constant 256 : i32
    %0 = arith.muli %arg2, %c256_i32 : i32
    %1 = tpu.assume_multiple %0, 256 : i32
    %c256_i32_0 = arith.constant 256 : i32
    %2 = arith.muli %arg3, %c256_i32_0 : i32
    %3 = tpu.assume_multiple %2, 256 : i32
    %c0_i32 = arith.constant 0 : i32
    %4 = arith.cmpi eq, %arg0, %c0_i32 : i32
    %c0_i32_1 = arith.constant 0 : i32
    %5 = arith.cmpi eq, %arg1, %c0_i32_1 : i32
    %6 = arith.andi %4, %5 : i1
    %c0_i32_2 = arith.constant 0 : i32
    %7 = arith.cmpi eq, %arg2, %c0_i32_2 : i32
    %8 = arith.andi %6, %7 : i1
    %c0_i32_3 = arith.constant 0 : i32
    %9 = arith.cmpi eq, %arg3, %c0_i32_3 : i32
    %10 = arith.andi %8, %9 : i1
    %11 = arith.extui %10 : i1 to i32
    %c0_i32_4 = arith.constant 0 : i32
    %12 = arith.cmpi ne, %11, %c0_i32_4 : i32
    scf.if %12 {
      tpu.enqueue_dma source(%arg5 : memref<32x256xf32, #tpu.memory_space<any>>) target(%arg8 : memref<32x256xf32, #tpu.memory_space<vmem>>) target_semaphore(%arg10 : memref<!tpu.dma_semaphore, #tpu.memory_space<semaphore_mem>>)
      tpu.wait_dma2 semaphore(%arg10 : memref<!tpu.dma_semaphore, #tpu.memory_space<semaphore_mem>>) src(%arg5 : memref<32x256xf32, #tpu.memory_space<any>>) dst(%arg8 : memref<32x256xf32, #tpu.memory_space<vmem>>)
      %c0_9 = arith.constant 0 : index
      %c0_10 = arith.constant 0 : index
      %20 = vector.load %arg8[%c0_9, %c0_10] : memref<32x256xf32, #tpu.memory_space<vmem>>, vector<32x256xf32>
      %cst = arith.constant 0.333333343 : f32
      %21 = vector.broadcast %cst : f32 to vector<32x256xf32>
      %22 = arith.mulf %20, %21 : vector<32x256xf32>
      %c0_11 = arith.constant 0 : index
      %c0_12 = arith.constant 0 : index
      %23 = vector.load %arg7[%c0_11, %c0_12] : memref<32x256xf32, #tpu.memory_space<vmem>>, vector<32x256xf32>
      tpu.vector_store %arg7[%c0_11, %c0_12], %22 {strides = array<i32>} : memref<32x256xf32, #tpu.memory_space<vmem>>, vector<32x256xf32>,
    } else {
    }
    %c0 = arith.constant 0 : index
    %c0_5 = arith.constant 0 : index
    %13 = vector.load %arg6[%c0, %c0_5] : memref<256x256xbf16, #tpu.memory_space<vmem>>, vector<256x256xbf16>
    %c0_i32_6 = arith.constant 0 : i32
    %14 = arith.cmpi eq, %arg1, %c0_i32_6 : i32
    %15 = arith.extui %14 : i1 to i32
    %c0_i32_7 = arith.constant 0 : i32
    %16 = arith.cmpi ne, %15, %c0_i32_7 : i32
    scf.if %16 {
      %c0_9 = arith.constant 0 : index
      %20 = arith.index_cast %1 : i32 to index
      %21 = vector.load %arg8[%c0_9, %20] : memref<32x256xf32, #tpu.memory_space<vmem>>, vector<32x256xf32>
      %22 = arith.truncf %21 : vector<32x256xf32> to vector<32x256xbf16>
      %cst = arith.constant dense<0.000000e+00> : vector<32x256xf32>
      %23 = tpu.matmul %22, %13, %cst {dimension_numbers = #tpu.dot_dimension_numbers<[1], [0], [0], [1], [0, 0, 1, 1], [], []>} : vector<32x256xbf16>, vector<256x256xbf16>, vector<32x256xf32> -> vector<32x256xf32>
      %c0_i32_10 = arith.constant 0 : i32
      %24 = arith.cmpi eq, %arg2, %c0_i32_10 : i32
      %25 = arith.extui %24 : i1 to i32
      %c0_i32_11 = arith.constant 0 : i32
      %26 = arith.cmpi ne, %25, %c0_i32_11 : i32
      scf.if %26 {
        %c0_16 = arith.constant 0 : index
        %33 = arith.index_cast %3 : i32 to index
        %34 = vector.load %arg9[%c0_16, %33] : memref<32x256xf32, #tpu.memory_space<vmem>>, vector<32x256xf32>
        tpu.vector_store %arg9[%c0_16, %33], %23 {strides = array<i32>} : memref<32x256xf32, #tpu.memory_space<vmem>>, vector<32x256xf32>,
      } else {
      }
      %c0_i32_12 = arith.constant 0 : i32
      %27 = arith.cmpi sgt, %arg2, %c0_i32_12 : i32
      %28 = arith.extui %27 : i1 to i32
      %c0_i32_13 = arith.constant 0 : i32
      %29 = arith.cmpi ne, %28, %c0_i32_13 : i32
      scf.if %29 {
        %c0_16 = arith.constant 0 : index
        %33 = arith.index_cast %3 : i32 to index
        %34 = vector.load %arg9[%c0_16, %33] : memref<32x256xf32, #tpu.memory_space<vmem>>, vector<32x256xf32>
        %35 = arith.addf %34, %23 : vector<32x256xf32>
        %c0_17 = arith.constant 0 : index
        %36 = arith.index_cast %3 : i32 to index
        %37 = vector.load %arg9[%c0_17, %36] : memref<32x256xf32, #tpu.memory_space<vmem>>, vector<32x256xf32>
        tpu.vector_store %arg9[%c0_17, %36], %35 {strides = array<i32>} : memref<32x256xf32, #tpu.memory_space<vmem>>, vector<32x256xf32>,
      } else {
      }
      %c0_i32_14 = arith.constant 0 : i32
      %30 = arith.cmpi eq, %arg2, %c0_i32_14 : i32
      %31 = arith.extui %30 : i1 to i32
      %c0_i32_15 = arith.constant 0 : i32
      %32 = arith.cmpi ne, %31, %c0_i32_15 : i32
      scf.if %32 {
        %c0_16 = arith.constant 0 : index
        %33 = arith.index_cast %3 : i32 to index
        %34 = vector.load %arg9[%c0_16, %33] : memref<32x256xf32, #tpu.memory_space<vmem>>, vector<32x256xf32>
        %c0_17 = arith.constant 0 : index
        %c0_18 = arith.constant 0 : index
        %35 = arith.index_cast %3 : i32 to index
        %36 = vector.load %arg4[%c0_17, %c0_18, %35] : memref<1x1x256xf32, #tpu.memory_space<vmem>>, vector<1x1x256xf32>
        %37 = vector.shape_cast %36 : vector<1x1x256xf32> to vector<1x256xf32>
        %38 = vector.broadcast %37 : vector<1x256xf32> to vector<32x256xf32>
        %39 = arith.mulf %34, %38 : vector<32x256xf32>
        %c0_19 = arith.constant 0 : index
        %40 = arith.index_cast %3 : i32 to index
        %41 = vector.load %arg9[%c0_19, %40] : memref<32x256xf32, #tpu.memory_space<vmem>>, vector<32x256xf32>
        tpu.vector_store %arg9[%c0_19, %40], %39 {strides = array<i32>} : memref<32x256xf32, #tpu.memory_space<vmem>>, vector<32x256xf32>,
      } else {
      }
    } else {
    }
    %c1_i32 = arith.constant 1 : i32
    %17 = arith.cmpi eq, %arg1, %c1_i32 : i32
    %18 = arith.extui %17 : i1 to i32
    %c0_i32_8 = arith.constant 0 : i32
    %19 = arith.cmpi ne, %18, %c0_i32_8 : i32
    scf.if %19 {
      %c0_9 = arith.constant 0 : index
      %20 = arith.index_cast %3 : i32 to index
      %21 = vector.load %arg9[%c0_9, %20] : memref<32x256xf32, #tpu.memory_space<vmem>>, vector<32x256xf32>
      %22 = arith.truncf %21 : vector<32x256xf32> to vector<32x256xbf16>
      %cst = arith.constant dense<0.000000e+00> : vector<32x256xf32>
      %23 = tpu.matmul %22, %13, %cst {dimension_numbers = #tpu.dot_dimension_numbers<[1], [1], [0], [0], [0, 0, 1, 0], [], []>} : vector<32x256xbf16>, vector<256x256xbf16>, vector<32x256xf32> -> vector<32x256xf32>
      %c0_i32_10 = arith.constant 0 : i32
      %24 = arith.cmpi eq, %arg3, %c0_i32_10 : i32
      %25 = arith.extui %24 : i1 to i32
      %c0_i32_11 = arith.constant 0 : i32
      %26 = arith.cmpi ne, %25, %c0_i32_11 : i32
      scf.if %26 {
        %c0_16 = arith.constant 0 : index
        %33 = arith.index_cast %1 : i32 to index
        %34 = vector.load %arg8[%c0_16, %33] : memref<32x256xf32, #tpu.memory_space<vmem>>, vector<32x256xf32>
        tpu.vector_store %arg8[%c0_16, %33], %23 {strides = array<i32>} : memref<32x256xf32, #tpu.memory_space<vmem>>, vector<32x256xf32>,
      } else {
      }
      %c0_i32_12 = arith.constant 0 : i32
      %27 = arith.cmpi sgt, %arg3, %c0_i32_12 : i32
      %28 = arith.extui %27 : i1 to i32
      %c0_i32_13 = arith.constant 0 : i32
      %29 = arith.cmpi ne, %28, %c0_i32_13 : i32
      scf.if %29 {
        %c0_16 = arith.constant 0 : index
        %33 = arith.index_cast %1 : i32 to index
        %34 = vector.load %arg8[%c0_16, %33] : memref<32x256xf32, #tpu.memory_space<vmem>>, vector<32x256xf32>
        %35 = arith.addf %34, %23 : vector<32x256xf32>
        %c0_17 = arith.constant 0 : index
        %36 = arith.index_cast %1 : i32 to index
        %37 = vector.load %arg8[%c0_17, %36] : memref<32x256xf32, #tpu.memory_space<vmem>>, vector<32x256xf32>
        tpu.vector_store %arg8[%c0_17, %36], %35 {strides = array<i32>} : memref<32x256xf32, #tpu.memory_space<vmem>>, vector<32x256xf32>,
      } else {
      }
      %c0_i32_14 = arith.constant 0 : i32
      %30 = arith.cmpi eq, %arg3, %c0_i32_14 : i32
      %31 = arith.extui %30 : i1 to i32
      %c0_i32_15 = arith.constant 0 : i32
      %32 = arith.cmpi ne, %31, %c0_i32_15 : i32
      scf.if %32 {
        %c0_16 = arith.constant 0 : index
        %33 = arith.index_cast %1 : i32 to index
        %34 = vector.load %arg7[%c0_16, %33] : memref<32x256xf32, #tpu.memory_space<vmem>>, vector<32x256xf32>
        %c0_17 = arith.constant 0 : index
        %35 = arith.index_cast %1 : i32 to index
        %36 = vector.load %arg8[%c0_17, %35] : memref<32x256xf32, #tpu.memory_space<vmem>>, vector<32x256xf32>
        %cst_18 = arith.constant 0.333333343 : f32
        %37 = vector.broadcast %cst_18 : f32 to vector<32x256xf32>
        %38 = arith.mulf %36, %37 : vector<32x256xf32>
        %39 = arith.addf %34, %38 : vector<32x256xf32>
        %c0_19 = arith.constant 0 : index
        %40 = arith.index_cast %1 : i32 to index
        %41 = vector.load %arg7[%c0_19, %40] : memref<32x256xf32, #tpu.memory_space<vmem>>, vector<32x256xf32>
        tpu.vector_store %arg7[%c0_19, %40], %39 {strides = array<i32>} : memref<32x256xf32, #tpu.memory_space<vmem>>, vector<32x256xf32>,
      } else {
      }
    } else {
    }
    return
  }
  func.func @transform_0(%arg0: i32, %arg1: i32, %arg2: i32, %arg3: i32) -> (i32, i32, i32) {
    %c0_i32 = arith.constant 0 : i32
    %c0_i32_0 = arith.constant 0 : i32
    %c0_i32_1 = arith.constant 0 : i32
    return %arg0, %c0_i32, %c0_i32_0 : i32, i32, i32
  }
  func.func @transform_2(%arg0: i32, %arg1: i32, %arg2: i32, %arg3: i32) -> (i32, i32) {
    %c0_i32 = arith.constant 0 : i32
    return %arg2, %arg3 : i32, i32
  }
  func.func @transform_3(%arg0: i32, %arg1: i32, %arg2: i32, %arg3: i32) -> (i32, i32) {
    %c0_i32 = arith.constant 0 : i32
    %c0_i32_0 = arith.constant 0 : i32
    %c0_i32_1 = arith.constant 0 : i32
    return %c0_i32, %c0_i32_0 : i32, i32
  }
}

</mosaic_0001>

<bundles_post_ra>
// kernel: tpu_custom_call.1
= control target key start
LH: loop header
LB: loop body
LE: loop exit
PB: predicated region body
PF: predicated region fallthrough
CT: control target
= control target key end

     0   :  { %8 = vsyncpa [#allocation6], 0  ;;  %s1926_s0 = inlined_call_operand.hbm [shape: f32[2,1,256], index: 0, kind: input, shape index: {}]   ;;  %s1927_s1 = inlined_call_operand.hbm [shape: f32[32,256], index: 1, kind: input, shape index: {}]   ;;  %s1928_s2 = inlined_call_operand.hbm [shape: bf16[256,256], index: 2, kind: input, shape index: {}]   ;;  %s1929_s3 = inlined_call_operand.hbm [shape: f32[32,256], index: 3, kind: output, shape index: {}]  }
   0x1   :  { %10 = vsyncpa [#allocation6 + $0x1], 0 }
   0x2   :  { %11 = vsyncpa [#allocation9], 0 }
   0x3   :  { %12 = vsyncpa [#allocation7], 0  ;;  %s1513_s12 = smov 0   ;;  %s1515_s13 = smov 0  }
   0x4   :  { %s1517_s14 = smov 0   ;;  %s1519_s15 = smov 0  }
   0x5   :  { %s1521_s16 = smov 0   ;;  %s1523_s17 = smov 0  }
   0x6   :  { %s1525_s18 = smov 0   ;;  %s1527_s19 = smov 0  }
   0x7 LB: > { %s1059_s20 = sadd.s32 4294967295, %s1483_s19   ;;  %p64_p0 = scmp.ne.s32.totalorder %s1459_s13, %s1455_s12  ;;  %s1483_s19 = sphi %s1527_s19, %s18_s19   ;;  %s1479_s18 = sphi %s1525_s18, %s1950_s18   ;;  %s1475_s17 = sphi %s1523_s17, %s1949_s17   ;;  %s1471_s16 = sphi %s1521_s16, %s1948_s16   ;;  %s1467_s15 = sphi %s1519_s15, %s1947_s15   ;;  %s1463_s14 = sphi %s1517_s14, %s1946_s14   ;;  %s1459_s13 = sphi %s1515_s13, %s1945_s13   ;;  %s1455_s12 = sphi %s1513_s12, %s1944_s12  }
   0x8   : > { %p1555_p1 = scmp.eq.s32.totalorder %s1059_s20, 0  ;;  %p1060_p2 = scmp.ge.s32.totalorder %s1483_s19, 1 }
   0x9   : > { %p124_p3 = scmp.lt.s32.totalorder %s1483_s19, 5  ;;  %s1485_s24 = smov [#allocation8]  }
   0xa   : > { %s1934_s21 = scalar_select %p1555_p1, 1, 0 }
   0xb   : > { %p1563_p4 = por %p1555_p1, %p64_p0  ;;  %p1567_p5 = pnand %p1060_p2, %p124_p3 }
   0xc   : > { %s142_s25 = sshll.u32 %s1485_s24, 4  ;;  %s1301_s29 = scalar_lea.hbm %s1928_s2, 4096  ;;  %s143_s25 = int_to_ptr.vmem [resolvable:$true] %s142_s25 }
   0xd   : > { %s1935_s22 = scalar_select %p1563_p4, 1, 0 }
   0xe   : > { %s1936_s23 = scalar_select %p1567_p5, 1, 0 }
   0xf   : > { %p1217_p6 = pneg %p1567_p5  ;;  %p1302_p8 = scmp.ne.s32.totalorder %s1928_s2, %s1301_s29 }
  0x10   : > { %p1308_p12 = scmp.lt.u32.totalorder %s1301_s29, %s1928_s2 }
  0x11   : > { %p1575_p7 = pnand %p1217_p6, %p1555_p1 }
  0x13   : > { %p1303_p9 = pneg %p1575_p7 }
  0x15   : > { %p1304_p10 = pnand %p1303_p9, %p1302_p8 }
  0x17   : > { %p1305_p11 = pneg %p1304_p10 }
  0x19   : > { %p1310_p13 = pnand %p1308_p12, %p1305_p11 }
  0x1b   : > { %1313 = shalt.err (!%p1310_p13)
}
  0x1c   : > { %s1314_s7 = scalar_lea.vmem %s143_s25, 4096  ;;  %p1322_p6 = scmp.lt.s32.totalorder %s143_s25, %s143_s25 }
  0x1d   : > { %p1315_p0 = scmp.ne.s32.totalorder %s143_s25, %s1314_s7  ;;  %p1323_p1 = scmp.lt.s32.totalorder %s1314_s7, %s1314_s7 }
  0x1f   : > { %p1317_p2 = pnand %p1315_p0, %p1303_p9  ;;  %p1324_p4 = por %p1323_p1, %p1322_p6 }
  0x21   : > { %p1318_p3 = pneg %p1317_p2 }
  0x23   : > { %p1325_p5 = pnand %p1324_p4, %p1318_p3 }
  0x25   : > { %1328 = shalt.err (!%p1325_p5)
}
  0x26   : > { %s1486_s8 = smov 128   ;;  %s1487_s9 = smov 8  }
  0x27   : > { %1220 = dma.hbm_to_vmem [thread:$0]  (!%p1575_p7), %s1928_s2, 4096, %s143_s25, [#allocation9], %s1486_s8, %s1486_s8, %s1487_s9  }
  0x28   : > { %s40_s12 = sadd.s32 1, %s1475_s17  ;;  %s44_s24 = sadd.s32 1, %s1479_s18 }
  0x29   : > { %p42_p1 = scmp.ge.s32.totalorder %s40_s12, 2  ;;  %s51_s27 = sadd.s32 1, %s1463_s14 }
  0x2a   : > { %p58_p4 = scmp.ne.s32.totalorder %s1463_s14, %s1459_s13  ;;  %p59_p5 = scmp.eq.s32.totalorder %s1483_s19, 0 }
  0x2b   : > { %s1952_s12 = smov (%p42_p1, %s40_s12), 0  ;;  %s1954_s24 = smov (!%p42_p1, %s44_s24), %s1479_s18 }
  0x2c   : > { %p1226_p8 = scmp.lt.s32.totalorder %s1483_s19, 4  ;;  %p46_p9 = scmp.ge.s32.totalorder %s1954_s24, 2 }
  0x2d   : > { %s156_s28 = sand.u32 1, %s1463_s14   ;;  %p60_p10 = por %p59_p5, %p58_p4 }
  0x2e   : > { %s1956_s24 = smov (%p46_p9, %s1954_s24), 0  ;;  %s1063_s26 = sshll.u32 %s156_s28, 1 }
  0x2f   : > { %s1142_s25 = sshll.u32 %s1479_s18, 5  ;;  %s48_s29 = ssub.s32 %s1479_s18, %s1956_s24 }
  0x30   : > { %p49_p7 = scmp.eq.s32.totalorder %s48_s29, 0  ;;  %s1614_s5 = scalar_lea.hbm %s1926_s0, %s1142_s25 }
  0x31   : > { %s160_s6 = scalar_lea.vmem [#allocation5], %s1063_s26  ;;  %p1616_p11 = pnand %p1226_p8, %p60_p10 }
  0x32   : > { %s168_s7 = sshll.u32 %s160_s6, 4  ;;  %s157_s10 = scalar_lea.sflag [#allocation6], %s156_s28  ;;  %s1623_s7 = int_to_ptr.vmem [resolvable:$true] %s168_s7 }
  0x33   : > { %s1621_s9 = scalar_select %p49_p7, %s1463_s14, %s51_s27  }
  0x34   : > { %s1329_s11 = scalar_lea.hbm %s1614_s5, 32  ;;  %p1331_p13 = pneg %p1616_p11 }
  0x35   : > { %p1330_p12 = scmp.ne.s32.totalorder %s1614_s5, %s1329_s11  ;;  %s1334_s29 = scalar_lea.hbm %s1926_s0, 64 }
  0x36   : > { %p1335_p3 = scmp.lt.u32.totalorder %s1614_s5, %s1926_s0  ;;  %p1336_p6 = scmp.lt.u32.totalorder %s1334_s29, %s1329_s11 }
  0x37   : > { %p1332_p0 = pnand %p1331_p13, %p1330_p12  ;;  %p1338_p4 = scmp.lt.u32.totalorder %s1329_s11, %s1614_s5 }
  0x38   : > { %p1337_p1 = por %p1336_p6, %p1335_p3 }
  0x39   : > { %p1333_p2 = pneg %p1332_p0 }
  0x3a   : > { %p1339_p5 = por %p1338_p4, %p1337_p1 }
  0x3c   : > { %p1340_p8 = pnand %p1339_p5, %p1333_p2 }
  0x3e   : > { %1343 = shalt.err (!%p1340_p8)
}
  0x3f   : > { %s1344_s27 = scalar_lea.vmem %s1623_s7, 32  ;;  %s1488_s28 = smov [#allocation5]  }
  0x40   : > { %p1345_p9 = scmp.ne.s32.totalorder %s1623_s7, %s1344_s27  ;;  %s1349_s6 = sshll.u32 %s1488_s28, 4  ;;  %s1350_s6 = int_to_ptr.vmem [resolvable:$false] %s1349_s6 }
  0x41   : > { %s1351_s26 = scalar_lea.vmem %s1350_s6, 64  ;;  %p1352_p12 = scmp.lt.s32.totalorder %s1623_s7, %s1350_s6 }
  0x42   : > { %p1347_p10 = pnand %p1345_p9, %p1331_p13  ;;  %p1353_p0 = scmp.lt.s32.totalorder %s1351_s26, %s1344_s27 }
  0x44   : > { %p1348_p7 = pneg %p1347_p10  ;;  %p1354_p3 = por %p1353_p0, %p1352_p12 }
  0x46   : > { %p1355_p6 = pnand %p1354_p3, %p1348_p7 }
  0x48   : > { %1358 = shalt.err (!%p1355_p6)
}
  0x49   : > { %1224 = dma.hbm_to_vmem [thread:$0]  (!%p1616_p11), %s1614_s5, 32, %s1623_s7, %s157_s10  }
  0x4a   : > { %p1939_p2 = scmp.ne.s32.totalorder %s1936_s23, 0 }
  0x4b   : > { %s179_s11 = sand.u32 (!%p1939_p2), 1, %s1459_s13   ;;  %p1940_p13 = scmp.ne.s32.totalorder (!%p1939_p2), %s1935_s22, 0 }
  0x4c   : > { %177 = sbr.rel (%p1939_p2) target bundleno = 782 (0x30e), region = 28  ;;  %s1653_s25 = sshll.u32 (!%p1939_p2), %s179_s11, 1 }
  0x4d   : > { %s180_s29 = scalar_lea.sflag (!%p1939_p2), [#allocation6], %s179_s11  ;;  %s183_s30 = scalar_lea.vmem (!%p1939_p2), [#allocation5], %s1653_s25 }
  0x53   : > { %1440 = dma.done.wait (%p1940_p13), %s180_s29, 32  }
  0x54   : > { %1442 = vsyncadd (%p1940_p13), %s180_s29, 4294967264  ;;  %p1941_p1 = scmp.ne.s32.totalorder %s1934_s21, 0 }
  0x56   : > { %1444 = dma.done.wait (%p1941_p1), [#allocation9], 4096  }
  0x57   : > { %1446 = vsyncadd (%p1941_p1), [#allocation9], 4294963200  ;;  %p207_p11 = scmp.eq.s32.totalorder %s1471_s16, 0  ;;  %p208_p4 = scmp.eq.s32.totalorder %s1467_s15, 0 }
  0x59   : > { %p209_p5 = pnand %p208_p4, %p207_p11 }
  0x5a   : > { %s1489_s23 = smov (!%p209_p5), [#allocation2]   ;;  %s1359_s22 = scalar_lea.hbm (!%p209_p5), %s1927_s1, 1024 }
  0x5b   : > { %218 = sbr.rel (%p209_p5) target bundleno = 117 (0x75), region = 40  ;;  %s226_s5 = sshll.u32 (!%p209_p5), %s1489_s23, 4  ;;  %s227_s5 = int_to_ptr.vmem [resolvable:$true] %s226_s5 }
  0x5c   : > { %p1360_p8 = scmp.ne.s32.totalorder (!%p209_p5), %s1927_s1, %s1359_s22  ;;  %p1363_p9 = scmp.lt.u32.totalorder (!%p209_p5), %s1359_s22, %s1927_s1 }
  0x5e   : > { %p1365_p10 = pnand (!%p209_p5), %p1363_p9, %p1360_p8 }
  0x62   : > { %1368 = shalt.err (!%p1365_p10)  }
  0x63   : > { %s1369_s16 = scalar_lea.vmem %s227_s5, 1024  ;;  %p1374_p12 = scmp.lt.s32.totalorder %s227_s5, %s227_s5 }
  0x64   : > { %p1370_p7 = scmp.ne.s32.totalorder %s227_s5, %s1369_s16  ;;  %p1375_p0 = scmp.lt.s32.totalorder %s1369_s16, %s1369_s16 }
  0x66   : > { %p1376_p3 = por %p1375_p0, %p1374_p12 }
  0x68   : > { %p1377_p6 = pnand %p1376_p3, %p1370_p7 }
  0x6a   : > { %1380 = shalt.err (!%p1377_p6)  }
  0x6b   : > { %229 = dma.hbm_to_vmem [thread:$0]  %s1927_s1, 1024, %s227_s5, [#allocation4] }
  0x6c   : > { %1447 = dma.done.wait [#allocation4], 1024 }
  0x6d   : > { %1448 = vsyncadd [#allocation4], 4294966272  ;;  %v234_v0 = vld [vmem:[#allocation2] sm:$0xff]  ;;  %v235_v1 = vld [vmem:[#allocation2 + $0x8] sm:$0xff] }
  0x6e   : > { %v236_v2 = vld [vmem:[#allocation2 + $0x10] sm:$0xff]  ;;  %v242_v3 = vmul.f32 0.33333334, %v234_v0  ;;  %v243_v4 = vmul.f32 0.33333334, %v235_v1  ;;  %v237_v6 = vld [vmem:[#allocation2 + $0x18] sm:$0xff] }
  0x6f   : > { %v244_v5 = vmul.f32 0.33333334, %v236_v2  ;;  %v238_v7 = vld [vmem:[#allocation2 + $0x20] sm:$0xff]  ;;  %v239_v8 = vld [vmem:[#allocation2 + $0x28] sm:$0xff]  ;;  %v245_v9 = vmul.f32 0.33333334, %v237_v6 }
  0x70   : > { %250 = vst [vmem:[#allocation10] sm:$0xff] %v242_v3  ;;  %251 = vst [vmem:[#allocation10 + $0x8] sm:$0xff] %v243_v4  ;;  %v246_v10 = vmul.f32 0.33333334, %v238_v7  ;;  %v247_v11 = vmul.f32 0.33333334, %v239_v8 }
  0x71   : > { %252 = vst [vmem:[#allocation10 + $0x10] sm:$0xff] %v244_v5  ;;  %v240_v12 = vld [vmem:[#allocation2 + $0x30] sm:$0xff]  ;;  %v241_v13 = vld [vmem:[#allocation2 + $0x38] sm:$0xff]  ;;  %253 = vst [vmem:[#allocation10 + $0x18] sm:$0xff] %v245_v9 }
  0x72   : > { %254 = vst [vmem:[#allocation10 + $0x20] sm:$0xff] %v246_v10  ;;  %255 = vst [vmem:[#allocation10 + $0x28] sm:$0xff] %v247_v11  ;;  %v248_v14 = vmul.f32 0.33333334, %v240_v12  ;;  %v249_v15 = vmul.f32 0.33333334, %v241_v13 }
  0x74   : > { %256 = vst [vmem:[#allocation10 + $0x30] sm:$0xff] %v248_v14  ;;  %257 = vst [vmem:[#allocation10 + $0x38] sm:$0xff] %v249_v15 }
  0x75 PF: > { %v1678_v16 = vld [vmem:[#allocation8] sm:$0xff]  ;;  %v1680_v17 = vld [vmem:[#allocation8 + $0x8] sm:$0xff]  ;;  %v1682_v18 = vld [vmem:[#allocation8 + $0x10] sm:$0xff]  ;;  %p1071_p2 = scmp.ne.s32.totalorder %s1467_s15, 0 }
  0x76   : > { %v1684_v19 = vld [vmem:[#allocation8 + $0x18] sm:$0xff]  ;;  %v1686_v20 = vld [vmem:[#allocation8 + $0x20] sm:$0xff]  ;;  %v1688_v21 = vld [vmem:[#allocation8 + $0x28] sm:$0xff]  ;;  %v1073_v48 = vcombine.high (!%p1071_p2), %v1678_v16, %v1680_v17  ;;  %v1072_v49 = vcombine.low (!%p1071_p2), %v1678_v16, %v1680_v17 }
  0x77   : > { %v1690_v22 = vld [vmem:[#allocation8 + $0x30] sm:$0xff]  ;;  %v1692_v23 = vld [vmem:[#allocation8 + $0x38] sm:$0xff]  ;;  %v1694_v24 = vld [vmem:[#allocation8 + $0x40] sm:$0xff]  ;;  %v1075_v50 = vcombine.high (!%p1071_p2), %v1682_v18, %v1684_v19  ;;  %v1074_v51 = vcombine.low (!%p1071_p2), %v1682_v18, %v1684_v19  ;;  %v1077_v52 = vcombine.high (!%p1071_p2), %v1686_v20, %v1688_v21  ;;  %v1076_v57 = vcombine.low (!%p1071_p2), %v1686_v20, %v1688_v21 }
  0x78   : > { %v1696_v25 = vld [vmem:[#allocation8 + $0x48] sm:$0xff]  ;;  %v1698_v26 = vld [vmem:[#allocation8 + $0x50] sm:$0xff]  ;;  %v1700_v27 = vld [vmem:[#allocation8 + $0x58] sm:$0xff]  ;;  %469 = vmatprep.subr.bf16.mxu0 (!%p1071_p2), %v1073_v48  ;;  %1143 = vmatprep.subr.bf16.mxu1 (!%p1071_p2), %v1073_v48  ;;  %v1079_v58 = vcombine.high (!%p1071_p2), %v1690_v22, %v1692_v23  ;;  %v1078_v61 = vcombine.low (!%p1071_p2), %v1690_v22, %v1692_v23 }
  0x79   : > { %v1702_v28 = vld [vmem:[#allocation8 + $0x60] sm:$0xff]  ;;  %v1704_v29 = vld [vmem:[#allocation8 + $0x68] sm:$0xff]  ;;  %v1706_v30 = vld [vmem:[#allocation8 + $0x70] sm:$0xff]  ;;  %292 = sbr.rel (%p1071_p2) target bundleno = 402 (0x192), region = 48  ;;  %470 = vmatpush1.bf16.msra.mxu0 (!%p1071_p2), %v1072_v49  ;;  %1159 = vmatpush1.bf16.msra.mxu1 (!%p1071_p2), %v1072_v49  ;;  %v1081_v62 = vcombine.high (!%p1071_p2), %v1694_v24, %v1696_v25  ;;  %v1080_v63 = vcombine.low (!%p1071_p2), %v1694_v24, %v1696_v25  ;;  %v1083_v0 = vcombine.high (!%p1071_p2), %v1698_v26, %v1700_v27 }
  0x7a   : > { %v1708_v31 = vld [vmem:[#allocation8 + $0x78] sm:$0xff]  ;;  %v1710_v32 = vld [vmem:[#allocation8 + $0x80] sm:$0xff]  ;;  %v1712_v33 = vld [vmem:[#allocation8 + $0x88] sm:$0xff]  ;;  %471 = vmatprep.subr.bf16.mxu0 (!%p1071_p2), %v1075_v50  ;;  %1144 = vmatprep.subr.bf16.mxu1 (!%p1071_p2), %v1075_v50  ;;  %v1082_v1 = vcombine.low (!%p1071_p2), %v1698_v26, %v1700_v27  ;;  %v1085_v2 = vcombine.high (!%p1071_p2), %v1702_v28, %v1704_v29  ;;  %v1084_v3 = vcombine.low (!%p1071_p2), %v1702_v28, %v1704_v29 }
  0x7b   : > { %v1714_v34 = vld [vmem:[#allocation8 + $0x90] sm:$0xff]  ;;  %v1716_v35 = vld [vmem:[#allocation8 + $0x98] sm:$0xff]  ;;  %v1718_v36 = vld [vmem:[#allocation8 + $0xa0] sm:$0xff]  ;;  %v1087_v4 = vcombine.high (!%p1071_p2), %v1706_v30, %v1708_v31  ;;  %v1086_v5 = vcombine.low (!%p1071_p2), %v1706_v30, %v1708_v31  ;;  %v1089_v6 = vcombine.high (!%p1071_p2), %v1710_v32, %v1712_v33  ;;  %v1088_v7 = vcombine.low (!%p1071_p2), %v1710_v32, %v1712_v33 }
  0x7c   : > { %v1720_v37 = vld [vmem:[#allocation8 + $0xa8] sm:$0xff]  ;;  %v1722_v38 = vld [vmem:[#allocation8 + $0xb0] sm:$0xff]  ;;  %v1724_v39 = vld [vmem:[#allocation8 + $0xb8] sm:$0xff]  ;;  %v1091_v8 = vcombine.high (!%p1071_p2), %v1714_v34, %v1716_v35  ;;  %v1090_v9 = vcombine.low (!%p1071_p2), %v1714_v34, %v1716_v35 }
  0x7d   : > { %v1726_v40 = vld [vmem:[#allocation8 + $0xc0] sm:$0xff]  ;;  %v1728_v41 = vld [vmem:[#allocation8 + $0xc8] sm:$0xff]  ;;  %v1730_v42 = vld [vmem:[#allocation8 + $0xd0] sm:$0xff]  ;;  %472 = vmatpush1.bf16.msra.mxu0 (!%p1071_p2), %v1074_v51  ;;  %1160 = vmatpush1.bf16.msra.mxu1 (!%p1071_p2), %v1074_v51  ;;  %v1093_v10 = vcombine.high (!%p1071_p2), %v1718_v36, %v1720_v37  ;;  %v1092_v11 = vcombine.low (!%p1071_p2), %v1718_v36, %v1720_v37  ;;  %v1095_v12 = vcombine.high (!%p1071_p2), %v1722_v38, %v1724_v39 }
  0x7e   : > { %v1732_v43 = vld [vmem:[#allocation8 + $0xd8] sm:$0xff]  ;;  %v1734_v44 = vld [vmem:[#allocation8 + $0xe0] sm:$0xff]  ;;  %v1736_v45 = vld [vmem:[#allocation8 + $0xe8] sm:$0xff]  ;;  %473 = vmatprep.subr.bf16.mxu0 (!%p1071_p2), %v1077_v52  ;;  %1145 = vmatprep.subr.bf16.mxu1 (!%p1071_p2), %v1077_v52  ;;  %v1094_v13 = vcombine.low (!%p1071_p2), %v1722_v38, %v1724_v39  ;;  %v1097_v14 = vcombine.high (!%p1071_p2), %v1726_v40, %v1728_v41  ;;  %v1096_v15 = vcombine.low (!%p1071_p2), %v1726_v40, %v1728_v41 }
  0x7f   : > { %v1738_v46 = vld [vmem:[#allocation8 + $0xf0] sm:$0xff]  ;;  %v1740_v47 = vld [vmem:[#allocation8 + $0xf8] sm:$0xff]  ;;  %v298_v53 = vld [vmem:[#allocation2 + $0x8] sm:$0xff] (!%p1071_p2)  ;;  %v1099_v48 = vcombine.high (!%p1071_p2), %v1730_v42, %v1732_v43  ;;  %v1098_v49 = vcombine.low (!%p1071_p2), %v1730_v42, %v1732_v43  ;;  %v1101_v50 = vcombine.high (!%p1071_p2), %v1734_v44, %v1736_v45  ;;  %v1100_v51 = vcombine.low (!%p1071_p2), %v1734_v44, %v1736_v45 }
  0x80   : > { %v300_v54 = vld [vmem:[#allocation2 + $0x18] sm:$0xff]  ;;  %v302_v55 = vld [vmem:[#allocation2 + $0x28] sm:$0xff]  ;;  %v1103_v52 = vcombine.high %v1738_v46, %v1740_v47 }
  0x81   : > { %v304_v56 = vld [vmem:[#allocation2 + $0x38] sm:$0xff]  ;;  %v306_v59 = vpack.c.bf16 %v300_v54, %v298_v53  ;;  %474 = vmatpush1.bf16.msra.mxu0 %v1076_v57  ;;  %1161 = vmatpush1.bf16.msra.mxu1 %v1076_v57  ;;  %v297_v53 = vld [vmem:[#allocation2] sm:$0xff]  ;;  %v1102_v54 = vcombine.low %v1738_v46, %v1740_v47  ;;  %v303_v57 = vld [vmem:[#allocation2 + $0x30] sm:$0xff] }
  0x82   : > { %v308_v60 = vpack.c.bf16 %v304_v56, %v302_v55  ;;  %475 = vmatprep.subr.bf16.mxu0 %v1079_v58  ;;  %1146 = vmatprep.subr.bf16.mxu1 %v1079_v58  ;;  %v299_v55 = vld [vmem:[#allocation2 + $0x10] sm:$0xff]  ;;  %v301_v56 = vld [vmem:[#allocation2 + $0x20] sm:$0xff] }
  0x83   : > { %501 = vmatprep.mubr.bf16.mxu0 %v306_v59  ;;  %v305_v58 = vpack.c.bf16 %v299_v55, %v297_v53  ;;  %v307_v59 = vpack.c.bf16 %v303_v57, %v301_v56 }
  0x84   : > { %511 = vmatprep.mubr.bf16.mxu1 %v308_v60  ;;  %v587_v60 = vlaneseq }
  0x85   : > { %476 = vmatpush1.bf16.msra.mxu0 %v1078_v61  ;;  %1162 = vmatpush1.bf16.msra.mxu1 %v1078_v61 }
  0x86   : > { %477 = vmatprep.subr.bf16.mxu0 %v1081_v62  ;;  %1147 = vmatprep.subr.bf16.mxu1 %v1081_v62  ;;  %v588_v61 = vshrl.u32 %v587_v60, 7 }
  0x88   : > { %v589_v62 = vsub.s32 0, %v588_v61 }
  0x89   : > { %478 = vmatpush1.bf16.msra.mxu0 %v1080_v63  ;;  %1163 = vmatpush1.bf16.msra.mxu1 %v1080_v63  ;;  %v585_v63 = vld [vmem:[%s183_s30] sm:$0x3] }
  0x8a   : > { %479 = vmatprep.subr.bf16.mxu0 %v1083_v0  ;;  %1148 = vmatprep.subr.bf16.mxu1 %v1083_v0  ;;  %v593_v0 = vsub.s32 1, %v588_v61 }
  0x8d   : > { %480 = vmatpush1.bf16.msra.mxu0 %v1082_v1  ;;  %1164 = vmatpush1.bf16.msra.mxu1 %v1082_v1  ;;  %v590_v1 = vrot.slane %v585_v63, %v589_v62 }
  0x8e   : > { %481 = vmatprep.subr.bf16.mxu0 %v1085_v2  ;;  %1149 = vmatprep.subr.bf16.mxu1 %v1085_v2  ;;  %v594_v2 = vrot.slane %v585_v63, %v593_v0 }
  0x91   : > { %482 = vmatpush1.bf16.msra.mxu0 %v1084_v3  ;;  %1165 = vmatpush1.bf16.msra.mxu1 %v1084_v3 }
  0x92   : > { %483 = vmatprep.subr.bf16.mxu0 %v1087_v4  ;;  %1150 = vmatprep.subr.bf16.mxu1 %v1087_v4 }
  0x95   : > { %484 = vmatpush1.bf16.msra.mxu0 %v1086_v5  ;;  %1166 = vmatpush1.bf16.msra.mxu1 %v1086_v5 }
  0x96   : > { %485 = vmatprep.subr.bf16.mxu0 %v1089_v6  ;;  %1151 = vmatprep.subr.bf16.mxu1 %v1089_v6 }
  0x99   : > { %486 = vmatpush1.bf16.msra.mxu0 %v1088_v7  ;;  %1167 = vmatpush1.bf16.msra.mxu1 %v1088_v7 }
  0x9a   : > { %487 = vmatprep.subr.bf16.mxu0 %v1091_v8  ;;  %1152 = vmatprep.subr.bf16.mxu1 %v1091_v8 }
  0x9d   : > { %488 = vmatpush1.bf16.msra.mxu0 %v1090_v9  ;;  %1168 = vmatpush1.bf16.msra.mxu1 %v1090_v9 }
  0x9e   : > { %489 = vmatprep.subr.bf16.mxu0 %v1093_v10  ;;  %1153 = vmatprep.subr.bf16.mxu1 %v1093_v10 }
  0xa1   : > { %490 = vmatpush1.bf16.msra.mxu0 %v1092_v11  ;;  %1169 = vmatpush1.bf16.msra.mxu1 %v1092_v11 }
  0xa2   : > { %491 = vmatprep.subr.bf16.mxu0 %v1095_v12  ;;  %1154 = vmatprep.subr.bf16.mxu1 %v1095_v12 }
  0xa5   : > { %492 = vmatpush1.bf16.msra.mxu0 %v1094_v13  ;;  %1170 = vmatpush1.bf16.msra.mxu1 %v1094_v13 }
  0xa6   : > { %493 = vmatprep.subr.bf16.mxu0 %v1097_v14  ;;  %1155 = vmatprep.subr.bf16.mxu1 %v1097_v14 }
  0xa9   : > { %494 = vmatpush1.bf16.msra.mxu0 %v1096_v15  ;;  %1171 = vmatpush1.bf16.msra.mxu1 %v1096_v15 }
  0xaa   : > { %495 = vmatprep.subr.bf16.mxu0 %v1099_v48  ;;  %1156 = vmatprep.subr.bf16.mxu1 %v1099_v48 }
  0xad   : > { %496 = vmatpush1.bf16.msra.mxu0 %v1098_v49  ;;  %1172 = vmatpush1.bf16.msra.mxu1 %v1098_v49 }
  0xae   : > { %497 = vmatprep.subr.bf16.mxu0 %v1101_v50  ;;  %1157 = vmatprep.subr.bf16.mxu1 %v1101_v50 }
  0xb1   : > { %498 = vmatpush1.bf16.msra.mxu0 %v1100_v51  ;;  %1173 = vmatpush1.bf16.msra.mxu1 %v1100_v51 }
  0xb2   : > { %499 = vmatprep.subr.bf16.mxu0 %v1103_v52  ;;  %1158 = vmatprep.subr.bf16.mxu1 %v1103_v52 }
  0xb5   : > { %500 = vmatpush1.bf16.msra.mxu0 %v1102_v54  ;;  %1174 = vmatpush1.bf16.msra.mxu1 %v1102_v54 }
  0xb8   : > { %502 = vmatmul.mubr.bf16.vlgmr.msra.gmra.mrb[0].mxu0 %v305_v58  ;;  %512 = vmatmul.mubr.bf16.vlgmr.msra.gmra.mrb[0].mxu1 %v307_v59 }
 0x18b   : > { %v503_v3 = vpop.f32.mrb[0].mxu0  ;;  %v513_v4 = vpop.f32.mrb[0].mxu1 }
 0x18c   : > { %v597_v5 = vmul.f32 %v590_v1, %v503_v3  ;;  %v601_v6 = vmul.f32 %v590_v1, %v513_v4  ;;  %v505_v7 = vpop.f32.mrb[1].mxu0  ;;  %v515_v8 = vpop.f32.mrb[1].mxu1 }
 0x18d   : > { %v598_v9 = vmul.f32 %v594_v2, %v505_v7  ;;  %v602_v10 = vmul.f32 %v594_v2, %v515_v8  ;;  %v507_v11 = vpop.f32.mrb[2].mxu0  ;;  %v517_v12 = vpop.f32.mrb[2].mxu1 }
 0x18e   : > { %605 = vst [vmem:[#allocation3] sm:$0xff] %v597_v5  ;;  %609 = vst [vmem:[#allocation3 + $0x20] sm:$0xff] %v601_v6  ;;  %v599_v13 = vmul.f32 %v590_v1, %v507_v11  ;;  %v603_v14 = vmul.f32 %v590_v1, %v517_v12  ;;  %v509_v15 = vpop.f32.mrb[3].mxu0  ;;  %v519_v48 = vpop.f32.mrb[3].mxu1 }
 0x18f   : > { %606 = vst [vmem:[#allocation3 + $0x8] sm:$0xff] %v598_v9  ;;  %610 = vst [vmem:[#allocation3 + $0x28] sm:$0xff] %v602_v10  ;;  %v600_v49 = vmul.f32 %v594_v2, %v509_v15  ;;  %v604_v50 = vmul.f32 %v594_v2, %v519_v48 }
 0x190   : > { %607 = vst [vmem:[#allocation3 + $0x10] sm:$0xff] %v599_v13  ;;  %611 = vst [vmem:[#allocation3 + $0x30] sm:$0xff] %v603_v14 }
 0x191   : > { %608 = vst [vmem:[#allocation3 + $0x18] sm:$0xff] %v600_v49  ;;  %612 = vst [vmem:[#allocation3 + $0x38] sm:$0xff] %v604_v50 }
 0x192 PF: > { %p1104_p13 = scmp.ne.s32.totalorder %s1467_s15, 1 }
 0x193   : > { %v1106_v51 = vcombine.high (!%p1104_p13), %v1678_v16, %v1680_v17  ;;  %v1105_v52 = vcombine.low (!%p1104_p13), %v1678_v16, %v1680_v17  ;;  %v1108_v53 = vcombine.high (!%p1104_p13), %v1682_v18, %v1684_v19  ;;  %v1107_v58 = vcombine.low (!%p1104_p13), %v1682_v18, %v1684_v19  ;;  %v901_v3 = vld [vmem:[#allocation10 + $0x8] sm:$0xff] (!%p1104_p13)  ;;  %v902_v7 = vld [vmem:[#allocation10 + $0x10] sm:$0xff] (!%p1104_p13)  ;;  %v903_v11 = vld [vmem:[#allocation10 + $0x18] sm:$0xff] (!%p1104_p13) }
 0x194   : > { %616 = sbr.rel (%p1104_p13) target bundleno = 756 (0x2f4), region = 64  ;;  %v1110_v59 = vcombine.high (!%p1104_p13), %v1686_v20, %v1688_v21  ;;  %v1109_v60 = vcombine.low (!%p1104_p13), %v1686_v20, %v1688_v21  ;;  %v1112_v61 = vcombine.high (!%p1104_p13), %v1690_v22, %v1692_v23  ;;  %v1111_v18 = vcombine.low (!%p1104_p13), %v1690_v22, %v1692_v23  ;;  %v905_v6 = vld [vmem:[#allocation10 + $0x28] sm:$0xff] (!%p1104_p13)  ;;  %v906_v8 = vld [vmem:[#allocation10 + $0x30] sm:$0xff] (!%p1104_p13)  ;;  %v907_v12 = vld [vmem:[#allocation10 + $0x38] sm:$0xff] (!%p1104_p13) }
 0x195   : > { %793 = vmatprep.subr.bf16.mxu0 (!%p1104_p13), %v1106_v51  ;;  %1175 = vmatprep.subr.bf16.mxu1 (!%p1104_p13), %v1106_v51  ;;  %v1114_v19 = vcombine.high (!%p1104_p13), %v1694_v24, %v1696_v25  ;;  %v1113_v20 = vcombine.low (!%p1104_p13), %v1694_v24, %v1696_v25  ;;  %v1116_v21 = vcombine.high (!%p1104_p13), %v1698_v26, %v1700_v27  ;;  %v625_v63 = vld [vmem:[#allocation3 + $0x20] sm:$0xff] (!%p1104_p13) }
 0x196   : > { %794 = vmatpush1.bf16.xpose.msra.mxu0 (!%p1104_p13), %v1105_v52  ;;  %1191 = vmatpush1.bf16.xpose.msra.mxu1 (!%p1104_p13), %v1105_v52  ;;  %v622_v54 = vld [vmem:[#allocation3 + $0x8] sm:$0xff] (!%p1104_p13)  ;;  %v1115_v22 = vcombine.low (!%p1104_p13), %v1698_v26, %v1700_v27  ;;  %v1118_v23 = vcombine.high (!%p1104_p13), %v1702_v28, %v1704_v29  ;;  %v1117_v24 = vcombine.low (!%p1104_p13), %v1702_v28, %v1704_v29 }
 0x197   : > { %795 = vmatprep.subr.bf16.mxu0 (!%p1104_p13), %v1108_v53  ;;  %1176 = vmatprep.subr.bf16.mxu1 (!%p1104_p13), %v1108_v53  ;;  %v626_v56 = vld [vmem:[#allocation3 + $0x28] sm:$0xff] (!%p1104_p13)  ;;  %v1120_v25 = vcombine.high (!%p1104_p13), %v1706_v30, %v1708_v31  ;;  %v1119_v26 = vcombine.low (!%p1104_p13), %v1706_v30, %v1708_v31  ;;  %v1122_v27 = vcombine.high (!%p1104_p13), %v1710_v32, %v1712_v33  ;;  %v623_v62 = vld [vmem:[#allocation3 + $0x10] sm:$0xff] (!%p1104_p13) }
 0x198   : > { %v624_v55 = vld [vmem:[#allocation3 + $0x18] sm:$0xff] (!%p1104_p13)  ;;  %v1121_v28 = vcombine.low (!%p1104_p13), %v1710_v32, %v1712_v33  ;;  %v1124_v29 = vcombine.high (!%p1104_p13), %v1714_v34, %v1716_v35  ;;  %v1123_v30 = vcombine.low (!%p1104_p13), %v1714_v34, %v1716_v35  ;;  %v1126_v31 = vcombine.high (!%p1104_p13), %v1718_v36, %v1720_v37  ;;  %v627_v0 = vld [vmem:[#allocation3 + $0x30] sm:$0xff] (!%p1104_p13) }
 0x199   : > { %v628_v57 = vld [vmem:[#allocation3 + $0x38] sm:$0xff] (!%p1104_p13)  ;;  %v630_v16 = vpack.c.bf16 (!%p1104_p13), %v624_v55, %v622_v54  ;;  %v1125_v32 = vcombine.low (!%p1104_p13), %v1718_v36, %v1720_v37  ;;  %v1128_v33 = vcombine.high (!%p1104_p13), %v1722_v38, %v1724_v39  ;;  %v1127_v34 = vcombine.low (!%p1104_p13), %v1722_v38, %v1724_v39 }
 0x19a   : > { %v632_v17 = vpack.c.bf16 (!%p1104_p13), %v628_v57, %v626_v56  ;;  %v1130_v35 = vcombine.high (!%p1104_p13), %v1726_v40, %v1728_v41  ;;  %v1129_v36 = vcombine.low (!%p1104_p13), %v1726_v40, %v1728_v41  ;;  %v1132_v37 = vcombine.high (!%p1104_p13), %v1730_v42, %v1732_v43 }
 0x19b   : > { %825 = vmatprep.mubr.bf16.mxu0 %v630_v16  ;;  %v1131_v38 = vcombine.low %v1730_v42, %v1732_v43  ;;  %v1134_v39 = vcombine.high %v1734_v44, %v1736_v45  ;;  %v1133_v40 = vcombine.low %v1734_v44, %v1736_v45  ;;  %v1136_v41 = vcombine.high %v1738_v46, %v1740_v47  ;;  %v621_v43 = vld [vmem:[#allocation3] sm:$0xff] }
 0x19c   : > { %835 = vmatprep.mubr.bf16.mxu1 %v632_v17  ;;  %v1135_v42 = vcombine.low %v1738_v46, %v1740_v47  ;;  %v629_v1 = vpack.c.bf16 %v623_v62, %v621_v43  ;;  %v631_v2 = vpack.c.bf16 %v627_v0, %v625_v63  ;;  %v900_v44 = vld [vmem:[#allocation10] sm:$0xff] }
 0x19d   : > { %v904_v45 = vld [vmem:[#allocation10 + $0x20] sm:$0xff] }
 0x19e   : > { %796 = vmatpush1.bf16.xpose.msra.mxu0 %v1107_v58  ;;  %1192 = vmatpush1.bf16.xpose.msra.mxu1 %v1107_v58 }
 0x19f   : > { %797 = vmatprep.subr.bf16.mxu0 %v1110_v59  ;;  %1177 = vmatprep.subr.bf16.mxu1 %v1110_v59 }
 0x1a6   : > { %798 = vmatpush1.bf16.xpose.msra.mxu0 %v1109_v60  ;;  %1193 = vmatpush1.bf16.xpose.msra.mxu1 %v1109_v60 }
 0x1a7   : > { %799 = vmatprep.subr.bf16.mxu0 %v1112_v61  ;;  %1178 = vmatprep.subr.bf16.mxu1 %v1112_v61 }
 0x1ae   : > { %800 = vmatpush1.bf16.xpose.msra.mxu0 %v1111_v18  ;;  %1194 = vmatpush1.bf16.xpose.msra.mxu1 %v1111_v18 }
 0x1af   : > { %801 = vmatprep.subr.bf16.mxu0 %v1114_v19  ;;  %1179 = vmatprep.subr.bf16.mxu1 %v1114_v19 }
 0x1b6   : > { %802 = vmatpush1.bf16.xpose.msra.mxu0 %v1113_v20  ;;  %1195 = vmatpush1.bf16.xpose.msra.mxu1 %v1113_v20 }
 0x1b7   : > { %803 = vmatprep.subr.bf16.mxu0 %v1116_v21  ;;  %1180 = vmatprep.subr.bf16.mxu1 %v1116_v21 }
 0x1be   : > { %804 = vmatpush1.bf16.xpose.msra.mxu0 %v1115_v22  ;;  %1196 = vmatpush1.bf16.xpose.msra.mxu1 %v1115_v22 }
 0x1bf   : > { %805 = vmatprep.subr.bf16.mxu0 %v1118_v23  ;;  %1181 = vmatprep.subr.bf16.mxu1 %v1118_v23 }
 0x1c6   : > { %806 = vmatpush1.bf16.xpose.msra.mxu0 %v1117_v24  ;;  %1197 = vmatpush1.bf16.xpose.msra.mxu1 %v1117_v24 }
 0x1c7   : > { %807 = vmatprep.subr.bf16.mxu0 %v1120_v25  ;;  %1182 = vmatprep.subr.bf16.mxu1 %v1120_v25 }
 0x1ce   : > { %808 = vmatpush1.bf16.xpose.msra.mxu0 %v1119_v26  ;;  %1198 = vmatpush1.bf16.xpose.msra.mxu1 %v1119_v26 }
 0x1cf   : > { %809 = vmatprep.subr.bf16.mxu0 %v1122_v27  ;;  %1183 = vmatprep.subr.bf16.mxu1 %v1122_v27 }
 0x1d6   : > { %810 = vmatpush1.bf16.xpose.msra.mxu0 %v1121_v28  ;;  %1199 = vmatpush1.bf16.xpose.msra.mxu1 %v1121_v28 }
 0x1d7   : > { %811 = vmatprep.subr.bf16.mxu0 %v1124_v29  ;;  %1184 = vmatprep.subr.bf16.mxu1 %v1124_v29 }
 0x1de   : > { %812 = vmatpush1.bf16.xpose.msra.mxu0 %v1123_v30  ;;  %1200 = vmatpush1.bf16.xpose.msra.mxu1 %v1123_v30 }
 0x1df   : > { %813 = vmatprep.subr.bf16.mxu0 %v1126_v31  ;;  %1185 = vmatprep.subr.bf16.mxu1 %v1126_v31 }
 0x1e6   : > { %814 = vmatpush1.bf16.xpose.msra.mxu0 %v1125_v32  ;;  %1201 = vmatpush1.bf16.xpose.msra.mxu1 %v1125_v32 }
 0x1e7   : > { %815 = vmatprep.subr.bf16.mxu0 %v1128_v33  ;;  %1186 = vmatprep.subr.bf16.mxu1 %v1128_v33 }
 0x1ee   : > { %816 = vmatpush1.bf16.xpose.msra.mxu0 %v1127_v34  ;;  %1202 = vmatpush1.bf16.xpose.msra.mxu1 %v1127_v34 }
 0x1ef   : > { %817 = vmatprep.subr.bf16.mxu0 %v1130_v35  ;;  %1187 = vmatprep.subr.bf16.mxu1 %v1130_v35 }
 0x1f6   : > { %818 = vmatpush1.bf16.xpose.msra.mxu0 %v1129_v36  ;;  %1203 = vmatpush1.bf16.xpose.msra.mxu1 %v1129_v36 }
 0x1f7   : > { %819 = vmatprep.subr.bf16.mxu0 %v1132_v37  ;;  %1188 = vmatprep.subr.bf16.mxu1 %v1132_v37 }
 0x1fe   : > { %820 = vmatpush1.bf16.xpose.msra.mxu0 %v1131_v38  ;;  %1204 = vmatpush1.bf16.xpose.msra.mxu1 %v1131_v38 }
 0x1ff   : > { %821 = vmatprep.subr.bf16.mxu0 %v1134_v39  ;;  %1189 = vmatprep.subr.bf16.mxu1 %v1134_v39 }
 0x206   : > { %822 = vmatpush1.bf16.xpose.msra.mxu0 %v1133_v40  ;;  %1205 = vmatpush1.bf16.xpose.msra.mxu1 %v1133_v40 }
 0x207   : > { %823 = vmatprep.subr.bf16.mxu0 %v1136_v41  ;;  %1190 = vmatprep.subr.bf16.mxu1 %v1136_v41 }
 0x20e   : > { %824 = vmatpush1.bf16.xpose.msra.mxu0 %v1135_v42  ;;  %1206 = vmatpush1.bf16.xpose.msra.mxu1 %v1135_v42 }
 0x215   : > { %826 = vmatmul.mubr.bf16.vlgmr.msra.gmra.mrb[0].mxu0 %v629_v1  ;;  %836 = vmatmul.mubr.bf16.vlgmr.msra.gmra.mrb[0].mxu1 %v631_v2 }
 0x2e8   : > { %v827_v4 = vpop.f32.mrb[0].mxu0  ;;  %v837_v5 = vpop.f32.mrb[0].mxu1 }
 0x2e9   : > { %853 = vst [vmem:[#allocation2] sm:$0xff] %v827_v4  ;;  %v918_v46 = vmul.f32 0.33333334, %v827_v4  ;;  %857 = vst [vmem:[#allocation2 + $0x20] sm:$0xff] %v837_v5  ;;  %v922_v47 = vmul.f32 0.33333334, %v837_v5 }
 0x2ea   : > { %v829_v9 = vpop.f32.mrb[1].mxu0  ;;  %v839_v10 = vpop.f32.mrb[1].mxu1 }
 0x2eb   : > { %854 = vst [vmem:[#allocation2 + $0x8] sm:$0xff] %v829_v9  ;;  %v919_v13 = vmul.f32 0.33333334, %v829_v9  ;;  %858 = vst [vmem:[#allocation2 + $0x28] sm:$0xff] %v839_v10  ;;  %v923_v14 = vmul.f32 0.33333334, %v839_v10  ;;  %v926_v49 = vadd.f32 %v918_v46, %v900_v44  ;;  %v930_v50 = vadd.f32 %v922_v47, %v904_v45 }
 0x2ec   : > { %v831_v15 = vpop.f32.mrb[2].mxu0  ;;  %v841_v48 = vpop.f32.mrb[2].mxu1 }
 0x2ed   : > { %855 = vst [vmem:[#allocation2 + $0x10] sm:$0xff] %v831_v15  ;;  %v920_v51 = vmul.f32 0.33333334, %v831_v15  ;;  %859 = vst [vmem:[#allocation2 + $0x30] sm:$0xff] %v841_v48  ;;  %v924_v52 = vmul.f32 0.33333334, %v841_v48  ;;  %v927_v55 = vadd.f32 %v919_v13, %v901_v3  ;;  %v931_v56 = vadd.f32 %v923_v14, %v905_v6 }
 0x2ee   : > { %v833_v53 = vpop.f32.mrb[3].mxu0  ;;  %v843_v54 = vpop.f32.mrb[3].mxu1  ;;  %934 = vst [vmem:[#allocation10] sm:$0xff] %v926_v49  ;;  %938 = vst [vmem:[#allocation10 + $0x20] sm:$0xff] %v930_v50 }
 0x2ef   : > { %856 = vst [vmem:[#allocation2 + $0x18] sm:$0xff] %v833_v53  ;;  %v921_v57 = vmul.f32 0.33333334, %v833_v53  ;;  %860 = vst [vmem:[#allocation2 + $0x38] sm:$0xff] %v843_v54  ;;  %v925_v58 = vmul.f32 0.33333334, %v843_v54  ;;  %v928_v59 = vadd.f32 %v920_v51, %v902_v7  ;;  %v932_v16 = vadd.f32 %v924_v52, %v906_v8 }
 0x2f0   : > { %935 = vst [vmem:[#allocation10 + $0x8] sm:$0xff] %v927_v55  ;;  %939 = vst [vmem:[#allocation10 + $0x28] sm:$0xff] %v931_v56 }
 0x2f1   : > { %v929_v17 = vadd.f32 %v921_v57, %v903_v11  ;;  %v933_v60 = vadd.f32 %v925_v58, %v907_v12  ;;  %936 = vst [vmem:[#allocation10 + $0x10] sm:$0xff] %v928_v59  ;;  %940 = vst [vmem:[#allocation10 + $0x30] sm:$0xff] %v932_v16 }
 0x2f3   : > { %937 = vst [vmem:[#allocation10 + $0x18] sm:$0xff] %v929_v17  ;;  %941 = vst [vmem:[#allocation10 + $0x38] sm:$0xff] %v933_v60 }
 0x2f4 PF: > { %p1876_p1 = scmp.eq.s32.totalorder %s1059_s20, 3  ;;  %s1490_s26 = smov [#allocation10]  }
 0x2f5   : > { %s948_s11 = sshll.u32 %s1490_s26, 4  ;;  %s949_s11 = int_to_ptr.vmem [resolvable:$true] %s948_s11 }
 0x2f6   : > { %s1381_s25 = scalar_lea.vmem %s949_s11, 1024  ;;  %p1388_p8 = scmp.lt.s32.totalorder %s949_s11, %s949_s11 }
 0x2f7   : > { %p1382_p11 = scmp.ne.s32.totalorder %s949_s11, %s1381_s25  ;;  %p1389_p9 = scmp.lt.s32.totalorder %s1381_s25, %s1381_s25 }
 0x2f9   : > { %p1383_p4 = pnand %p1382_p11, %p1876_p1  ;;  %p1390_p10 = por %p1389_p9, %p1388_p8 }
 0x2fb   : > { %p1384_p5 = pneg %p1383_p4 }
 0x2fd   : > { %p1391_p7 = pnand %p1390_p10, %p1384_p5 }
 0x2ff   : > { %1394 = shalt.err (!%p1391_p7)
}
 0x300   : > { %s1395_s20 = scalar_lea.hbm %s1929_s3, 1024 }
 0x301   : > { %p1396_p12 = scmp.ne.s32.totalorder %s1929_s3, %s1395_s20  ;;  %p1401_p6 = scmp.lt.u32.totalorder %s1395_s20, %s1929_s3 }
 0x303   : > { %p1397_p0 = pnand %p1396_p12, %p1876_p1 }
 0x305   : > { %p1398_p3 = pneg %p1397_p0 }
 0x307   : > { %p1403_p2 = pnand %p1401_p6, %p1398_p3 }
 0x309   : > { %1406 = shalt.err (!%p1403_p2)
}
 0x30a   : > { %s1491_s22 = smov 256   ;;  %s1492_s10 = smov 16  }
 0x30b   : > { %1214 = dma.vmem_to_hbm [thread:$0]  (%p1876_p1), %s949_s11, 1024, %s1929_s3, [#allocation7], %s1491_s22, %s1491_s22, %s1492_s10  }
 0x30c   : > { %1450 = dma.done.wait (%p1876_p1), [#allocation7], 1024  }
 0x30d   : > { %1452 = vsyncadd (%p1876_p1), [#allocation7], 4294966272 }
 0x30e PF: > { %s18_s19 = sadd.s32 1, %s1483_s19   ;;  %s1943_s21 = smov %s1952_s12 }
 0x30f   : > { %p15_p13 = scmp.ge.s32.totalorder %s18_s19, 6   ;;  %s1944_s12 = smov %s1459_s13 }
 0x310   : > { %s1945_s13 = smov %s1463_s14  ;;  %s1946_s14 = smov %s1621_s9 }
 0x311   : > { %s1947_s15 = smov %s1475_s17  ;;  %s1948_s16 = smov %s1479_s18 }
 0x312   : > { %s1949_s17 = smov %s1943_s21  ;;  %s1950_s18 = smov %s1956_s24 }
 0x313   :  { %17 = sbr.rel (!%p15_p13) target bundleno = 7 (0x7), region = 120 }
 0x31a   :  { %964 = vsyncpa [#allocation6], 1 }
 0x31b   :  { %966 = vsyncpa [#allocation6 + $0x1], 1 }
 0x31c   :  { %967 = vsyncpa [#allocation9], 1 }
 0x31d   :  { %968 = vsyncpa [#allocation7], 1 }
 0x31e   :  { %970 = vsyncpa [#allocation7 + $0x1], 1 }
 0x31f   :  { %971 = vsyncmov [#allocation4] }
 0x322   :  { %s972_s28 = vpop.sfrf %971 }
 0x323   :  { %p1141_p1 = scmp.ne.s32.totalorder %s972_s28, 0 }
 0x325   :  { %976 = shalt.err (%p1141_p1)  }

</bundles_post_ra>
